<compile_context>
chip_gen: v6e
topology: v6e:2x2x1
jax: 0.10.0
libtpu: 0.0.40
codegen_flags: <defaults>
</compile_context>

<pallas_src>
import math

import jax
import jax.numpy as jnp
from jax.experimental import pallas as pl
from jax.experimental.pallas import tpu as pltpu


def _get_kernel_num(C, gamma=2, b=1):
    # Mirrors ChannelAttention.get_kernel_num
    t = math.log2(C) / gamma + b / gamma
    floor = math.floor(t)
    return floor + (1 - floor % 2)


def _round_up(a, m):
    return -(-a // m) * m


# ----------------------------------------------------------------------------- kernel


def _make_kernel(Bt, C, HW, hw_tile, n_hw, k, pad, needs_mask):
    inv_hw = 1.0 / float(HW)
    BtC = Bt * C

    def kernel(params_ref, x_ref, o_ref, sum_ref, max_ref):
        # params_ref: SMEM (3 + k,) -> [alpha, beta, conv_bias, w_0, ..., w_{k-1}]
        # x_ref     : VMEM (Bt, C, hw_tile) spatial tile of Bt batch elements
        # o_ref     : VMEM (Bt, C, 1) output block (written on last hw step)
        # sum_ref/max_ref: VMEM (Bt, C, 1) f32 running accumulators
        hw_step = pl.program_id(1)

        @pl.when(hw_step == 0)
        def _init():
            sum_ref[...] = jnp.zeros_like(sum_ref)
            max_ref[...] = jnp.full_like(max_ref, -jnp.inf)

        def _accumulate(mask_tail):
            xt = x_ref[...].astype(jnp.float32)              # (Bt, C, hw_tile)
            if mask_tail:
                lane = jax.lax.broadcasted_iota(jnp.int32, (Bt, C, hw_tile), 2)
                valid = ((n_hw - 1) * hw_tile + lane) < HW   # only ever the last tile
                xs = jnp.where(valid, xt, 0.0)
                xm = jnp.where(valid, xt, -jnp.inf)
            else:
                xs = xt
                xm = xt
            sum_ref[...] += jnp.sum(xs, axis=2, keepdims=True)       # (Bt, C, 1)
            max_ref[...] = jnp.maximum(max_ref[...],
                                       jnp.max(xm, axis=2, keepdims=True))

        if needs_mask:
            # Mask only the tail tile; every other tile runs the unmasked fast path.
            @pl.when(hw_step < n_hw - 1)
            def _body():
                _accumulate(False)

            @pl.when(hw_step == n_hw - 1)
            def _tail():
                _accumulate(True)
        else:
            _accumulate(False)

        @pl.when(hw_step == n_hw - 1)
        def _finalize():
            alpha = params_ref[0]
            beta = params_ref[1]
            bias = params_ref[2]

            f_avg = sum_ref[...] * inv_hw                    # (Bt, C, 1)
            f_max = max_ref[...]                             # (Bt, C, 1)
            f_add = 0.5 * (f_avg + f_max) + alpha * f_avg + beta * f_max

            # k-tap Conv1d over the channel axis (zero padded, cross-correlation),
            # done as k sublane rotations + boundary masks:
            #   conv[b, c] = bias + sum_j w[j] * f_add[b, c + j - pad]   (0 if OOB)
            # Channels stay on sublanes the whole way; batch elements are contiguous
            # C-blocks of the flattened vector and the per-channel mask also kills any
            # cross-batch / wrap-around contamination from the circular roll.
            f_flat = f_add.reshape(BtC, 1)
            c_idx = jax.lax.broadcasted_iota(jnp.int32, (Bt, C, 1), 1).reshape(BtC, 1)

            acc = jnp.zeros((BtC, 1), jnp.float32)
            for j in range(k):                               # k is small & static
                d = j - pad
                w_j = params_ref[3 + j]
                if d == 0:
                    acc = acc + w_j * f_flat
                else:
                    shifted = pltpu.roll(f_flat, shift=(-d) % BtC, axis=0)
                    valid = jnp.logical_and(c_idx + d >= 0, c_idx + d < C)
                    acc = acc + w_j * jnp.where(valid, shifted, 0.0)

            conv = acc + bias
            o_ref[...] = jax.nn.sigmoid(conv).reshape(Bt, C, 1).astype(o_ref.dtype)

    return kernel


# ------------------------------------------------------------------------ tile sizing

_STEP_TARGET_BYTES = 24 * 1024 * 1024      # resident footprint target per grid step
_VMEM_LIMIT_CAP = 40 * 1024 * 1024         # safe on v7x (64 MiB physical VMEM)
_MAX_BATCH_TILE = 32


def _block_footprint(Bt, hw_block, C, x_itemsize, out_itemsize):
    """Conservative VMEM bytes for one grid step (dbl-buffered in/out + scratch)."""
    sub_in = max(8, 32 // x_itemsize)                     # sublane packing of x dtype
    c_in = _round_up(C, sub_in)
    hw_pad = _round_up(hw_block, 128)
    in_tile = Bt * c_in * hw_pad * x_itemsize
    c8 = _round_up(C, 8)
    out_blk = Bt * c8 * 128 * max(out_itemsize, 4)        # (Bt, C, 1) lane-padded
    scratch = 2 * Bt * c8 * 128 * 4                       # f32 sum + max accumulators
    return 2 * in_tile + 2 * out_blk + scratch


def _choose_tiling(B, C, HW, x_itemsize, out_itemsize):
    # Batch packing only when channel blocks stay sublane-aligned (true for ResNet).
    max_bt = min(B, _MAX_BATCH_TILE) if C % 8 == 0 else 1

    # Prefer hw_tile == HW: each input block is one contiguous HBM slab per batch row.
    if _block_footprint(1, HW, C, x_itemsize, out_itemsize) <= _STEP_TARGET_BYTES:
        bt = 1
        for d in range(1, max_bt + 1):
            if B % d == 0 and (_block_footprint(d, HW, C, x_itemsize, out_itemsize)
                               <= _STEP_TARGET_BYTES):
                bt = d
        return bt, HW

    # Spatial-tiling fallback (C*HW too large for one block): Bt=1, lane-aligned tile
    # of at least 512 lanes so the strided per-channel bursts stay wide.
    sub_in = max(8, 32 // x_itemsize)
    c_in = _round_up(C, sub_in)
    fixed = _block_footprint(1, 0, C, x_itemsize, out_itemsize)
    avail = max(_STEP_TARGET_BYTES - fixed, 2 * c_in * 512 * x_itemsize)
    hw_tile = max(512, (avail // (2 * c_in * x_itemsize)) // 128 * 128)
    hw_tile = min(hw_tile, _round_up(HW, 128))
    return 1, int(hw_tile)


# --------------------------------------------------------------------------- wrapper


def channel_attention(x, alpha, beta, conv_w, conv_b, *, _tiling_override=None):
    """x: (B, C, H, W) -> (B, C, 1, 1) channel-attention map (sigmoid weights).

    `_tiling_override=(Bt, hw_tile)` is a TEST-ONLY hook to exercise the multi-step /
    masked-tail code paths at small shapes; production callers should never pass it.
    """
    B, C, H, W = x.shape
    HW = H * W
    conv_w = jnp.ravel(conv_w)
    k = int(conv_w.shape[0])
    pad = k // 2
    x_itemsize = jnp.dtype(x.dtype).itemsize
    out_itemsize = x_itemsize

    if _tiling_override is not None:
        Bt, hw_tile = _tiling_override
        Bt = max(1, min(int(Bt), B))
        if C % 8 != 0:
            Bt = 1
        assert B % Bt == 0, "batch tile must divide B"
        hw_tile = min(int(hw_tile), HW)
    else:
        Bt, hw_tile = _choose_tiling(B, C, HW, x_itemsize, out_itemsize)

    n_hw = int(pl.cdiv(HW, hw_tile))
    needs_mask = (HW % hw_tile) != 0

    # Scalars + the k conv taps all ride in one small SMEM vector.
    params = jnp.concatenate(
        [jnp.ravel(alpha), jnp.ravel(beta), jnp.ravel(conv_b), conv_w]
    ).astype(jnp.float32)

    x3 = x.reshape(B, C, HW)        # free reshape, native dtype (bf16 stays bf16)

    kernel = _make_kernel(Bt, C, HW, hw_tile, n_hw, k, pad, needs_mask)

    footprint = _block_footprint(Bt, hw_tile, C, x_itemsize, out_itemsize)
    vmem_limit = int(min(max(2 * footprint, 16 * 1024 * 1024), _VMEM_LIMIT_CAP))

    out = pl.pallas_call(
        kernel,
        out_shape=jax.ShapeDtypeStruct((B, C, 1), x.dtype),
        grid=(B // Bt, n_hw),
        in_specs=[
            pl.BlockSpec(memory_space=pltpu.MemorySpace.SMEM),           # scalar params
            pl.BlockSpec((Bt, C, hw_tile), lambda b, h: (b, 0, h)),      # x tile
        ],
        out_specs=pl.BlockSpec((Bt, C, 1), lambda b, h: (b, 0, 0)),
        scratch_shapes=[
            pltpu.VMEM((Bt, C, 1), jnp.float32),    # running sum
            pltpu.VMEM((Bt, C, 1), jnp.float32),    # running max
        ],
        compiler_params=pltpu.CompilerParams(
            dimension_semantics=("parallel", "arbitrary"),
            vmem_limit_bytes=vmem_limit),
        cost_estimate=pl.CostEstimate(
            flops=3 * B * C * HW,
            transcendentals=B * C,
            bytes_accessed=B * C * HW * x_itemsize + B * C * out_itemsize),
    )(params, x3)

    return out.reshape(B, C, 1, 1)


def channel_attention_ref(x, alpha, beta, conv_w, conv_b):
    """Pure-JAX reference matching the PyTorch forward."""
    f_avg = jnp.mean(x, axis=(2, 3), keepdims=True)
    f_max = jnp.max(x, axis=(2, 3), keepdims=True)
    f_add = 0.5 * (f_avg + f_max) + alpha * f_avg + beta * f_max        # (B, C, 1, 1)
    seq = f_add[:, :, 0, 0]                                             # (B, C)
    w = jnp.ravel(conv_w)
    # nn.Conv1d is cross-correlation -> flip taps for jnp.convolve.
    conv = jax.vmap(lambda s: jnp.convolve(s, w[::-1], mode="same"))(seq) + conv_b
    return jax.nn.sigmoid(conv)[:, :, None, None]


if __name__ == "__main__":
    key = jax.random.PRNGKey(0)

    def run_case(B, C, H, W, seed_key, tiling=None):
        k = _get_kernel_num(C)                 # C=64 -> k=3; C=256 -> k=5
        kx, kw, kb = jax.random.split(seed_key, 3)
        x = jax.random.normal(kx, (B, C, H, W), dtype=jnp.float32)

        # Parameters (shapes from the module's __init__):
        alpha = jnp.array([0.5], dtype=jnp.float32)
        beta = jnp.array([0.5], dtype=jnp.float32)
        bound = 1.0 / math.sqrt(k)
        conv_w = jax.random.uniform(kw, (k,), minval=-bound, maxval=bound,
                                    dtype=jnp.float32)
        conv_b = jax.random.uniform(kb, (1,), minval=-bound, maxval=bound,
                                    dtype=jnp.float32)

        out = channel_attention(x, alpha, beta, conv_w, conv_b,
                                _tiling_override=tiling)
        jax.block_until_ready(out)
        ref = channel_attention_ref(x, alpha, beta, conv_w, conv_b)
        assert out.shape == (B, C, 1, 1)
        err = float(jnp.max(jnp.abs(out - ref)))
        assert err < 1e-5, err

    k0, k1, k2, k3 = jax.random.split(key, 4)
    # resnet18-style channel counts, small spatial extents.
    run_case(2, 64, 16, 16, k0)                       # default: Bt=2, hw_tile=HW, 1 step
    run_case(2, 64, 16, 16, k1, tiling=(1, 128))      # 2 reduction steps, exact tiling
    run_case(2, 64, 15, 20, k2, tiling=(2, 128))      # 3 steps, masked tail, packed batch
    run_case(2, 256, 5, 5, k3)                        # deep-layer style, k=5 conv taps
    print("KERNEL_OK")
</pallas_src>

<mosaic_0001>
module attributes {stable_mosaic.version = 11 : i64} {
  func.func @kernel(%arg0: i32, %arg1: i32, %arg2: memref<6xf32, #tpu.memory_space<smem>>, %arg3: memref<2x64x256xf32, #tpu.memory_space<vmem>>, %arg4: memref<2x64x1xf32, #tpu.memory_space<vmem>>, %arg5: memref<2x64x1xf32, #tpu.memory_space<vmem>>, %arg6: memref<2x64x1xf32, #tpu.memory_space<vmem>>) attributes {dimension_semantics = [#tpu.dimension_semantics<parallel>, #tpu.dimension_semantics<arbitrary>], iteration_bounds = array<i64: 1, 1>, scalar_prefetch = 0 : i64, scratch_operands = 2 : i64, tpu.core_type = #tpu.core_type<tc>, window_params = [{transform_indices = @transform_0, window_bounds = array<i64: 6>}, {transform_indices = @transform_1, window_bounds = array<i64: 2, 64, 256>}, {transform_indices = @transform_2, window_bounds = array<i64: 2, 64, 1>}]} {
    %c0_i32 = arith.constant 0 : i32
    %0 = arith.cmpi eq, %arg1, %c0_i32 : i32
    %1 = arith.extui %0 : i1 to i32
    %c0_i32_0 = arith.constant 0 : i32
    %2 = arith.cmpi ne, %1, %c0_i32_0 : i32
    scf.if %2 {
      %cst_18 = arith.constant 0.000000e+00 : f32
      %17 = vector.broadcast %cst_18 : f32 to vector<2x64x1xf32>
      %c0_19 = arith.constant 0 : index
      %c0_20 = arith.constant 0 : index
      %c0_21 = arith.constant 0 : index
      %18 = vector.load %arg5[%c0_19, %c0_20, %c0_21] : memref<2x64x1xf32, #tpu.memory_space<vmem>>, vector<2x64x1xf32>
      tpu.vector_store %arg5[%c0_19, %c0_20, %c0_21], %17 {strides = array<i32>} : memref<2x64x1xf32, #tpu.memory_space<vmem>>, vector<2x64x1xf32>,
      %cst_22 = arith.constant 0xFF800000 : f32
      %19 = vector.broadcast %cst_22 : f32 to vector<2x64x1xf32>
      %c0_23 = arith.constant 0 : index
      %c0_24 = arith.constant 0 : index
      %c0_25 = arith.constant 0 : index
      %20 = vector.load %arg6[%c0_23, %c0_24, %c0_25] : memref<2x64x1xf32, #tpu.memory_space<vmem>>, vector<2x64x1xf32>
      tpu.vector_store %arg6[%c0_23, %c0_24, %c0_25], %19 {strides = array<i32>} : memref<2x64x1xf32, #tpu.memory_space<vmem>>, vector<2x64x1xf32>,
    } else {
    }
    %c0 = arith.constant 0 : index
    %c0_1 = arith.constant 0 : index
    %c0_2 = arith.constant 0 : index
    %3 = vector.load %arg3[%c0, %c0_1, %c0_2] : memref<2x64x256xf32, #tpu.memory_space<vmem>>, vector<2x64x256xf32>
    %c0_3 = arith.constant 0 : index
    %c0_4 = arith.constant 0 : index
    %c0_5 = arith.constant 0 : index
    %4 = vector.load %arg5[%c0_3, %c0_4, %c0_5] : memref<2x64x1xf32, #tpu.memory_space<vmem>>, vector<2x64x1xf32>
    %cst = arith.constant dense<0.000000e+00> : vector<2x64xf32>
    %5 = vector.multi_reduction <add>, %3, %cst [2] : vector<2x64x256xf32> to vector<2x64xf32>
    %6 = vector.shape_cast %5 : vector<2x64xf32> to vector<2x64x1xf32>
    %7 = arith.addf %4, %6 : vector<2x64x1xf32>
    %c0_6 = arith.constant 0 : index
    %c0_7 = arith.constant 0 : index
    %c0_8 = arith.constant 0 : index
    %8 = vector.load %arg5[%c0_6, %c0_7, %c0_8] : memref<2x64x1xf32, #tpu.memory_space<vmem>>, vector<2x64x1xf32>
    tpu.vector_store %arg5[%c0_6, %c0_7, %c0_8], %7 {strides = array<i32>} : memref<2x64x1xf32, #tpu.memory_space<vmem>>, vector<2x64x1xf32>,
    %c0_9 = arith.constant 0 : index
    %c0_10 = arith.constant 0 : index
    %c0_11 = arith.constant 0 : index
    %9 = vector.load %arg6[%c0_9, %c0_10, %c0_11] : memref<2x64x1xf32, #tpu.memory_space<vmem>>, vector<2x64x1xf32>
    %cst_12 = arith.constant dense<0xFF800000> : vector<2x64xf32>
    %10 = vector.multi_reduction <maximumf>, %3, %cst_12 [2] : vector<2x64x256xf32> to vector<2x64xf32>
    %11 = vector.shape_cast %10 : vector<2x64xf32> to vector<2x64x1xf32>
    %12 = arith.maximumf %9, %11 : vector<2x64x1xf32>
    %c0_13 = arith.constant 0 : index
    %c0_14 = arith.constant 0 : index
    %c0_15 = arith.constant 0 : index
    %13 = vector.load %arg6[%c0_13, %c0_14, %c0_15] : memref<2x64x1xf32, #tpu.memory_space<vmem>>, vector<2x64x1xf32>
    tpu.vector_store %arg6[%c0_13, %c0_14, %c0_15], %12 {strides = array<i32>} : memref<2x64x1xf32, #tpu.memory_space<vmem>>, vector<2x64x1xf32>,
    %c0_i32_16 = arith.constant 0 : i32
    %14 = arith.cmpi eq, %arg1, %c0_i32_16 : i32
    %15 = arith.extui %14 : i1 to i32
    %c0_i32_17 = arith.constant 0 : i32
    %16 = arith.cmpi ne, %15, %c0_i32_17 : i32
    scf.if %16 {
      %c0_18 = arith.constant 0 : index
      %17 = memref.load %arg2[%c0_18] : memref<6xf32, #tpu.memory_space<smem>>
      %c1 = arith.constant 1 : index
      %18 = memref.load %arg2[%c1] : memref<6xf32, #tpu.memory_space<smem>>
      %c2 = arith.constant 2 : index
      %19 = memref.load %arg2[%c2] : memref<6xf32, #tpu.memory_space<smem>>
      %c0_19 = arith.constant 0 : index
      %c0_20 = arith.constant 0 : index
      %c0_21 = arith.constant 0 : index
      %20 = vector.load %arg5[%c0_19, %c0_20, %c0_21] : memref<2x64x1xf32, #tpu.memory_space<vmem>>, vector<2x64x1xf32>
      %cst_22 = arith.constant 3.906250e-03 : f32
      %21 = vector.broadcast %cst_22 : f32 to vector<2x64x1xf32>
      %22 = arith.mulf %20, %21 : vector<2x64x1xf32>
      %c0_23 = arith.constant 0 : index
      %c0_24 = arith.constant 0 : index
      %c0_25 = arith.constant 0 : index
      %23 = vector.load %arg6[%c0_23, %c0_24, %c0_25] : memref<2x64x1xf32, #tpu.memory_space<vmem>>, vector<2x64x1xf32>
      %24 = arith.addf %22, %23 : vector<2x64x1xf32>
      %cst_26 = arith.constant 5.000000e-01 : f32
      %25 = vector.broadcast %cst_26 : f32 to vector<2x64x1xf32>
      %26 = arith.mulf %25, %24 : vector<2x64x1xf32>
      %27 = vector.broadcast %17 : f32 to vector<2x64x1xf32>
      %28 = arith.mulf %27, %22 : vector<2x64x1xf32>
      %29 = arith.addf %26, %28 : vector<2x64x1xf32>
      %30 = vector.broadcast %18 : f32 to vector<2x64x1xf32>
      %31 = arith.mulf %30, %23 : vector<2x64x1xf32>
      %32 = arith.addf %29, %31 : vector<2x64x1xf32>
      %33 = vector.shape_cast %32 : vector<2x64x1xf32> to vector<128x1xf32>
      %34 = tpu.iota {dimensions = array<i32: 1>} : vector<2x64x1xi32>
      %35 = vector.shape_cast %34 : vector<2x64x1xi32> to vector<128x1xi32>
      %cst_27 = arith.constant 0.000000e+00 : f32
      %36 = vector.broadcast %cst_27 : f32 to vector<128x1xf32>
      %c3 = arith.constant 3 : index
      %37 = memref.load %arg2[%c3] : memref<6xf32, #tpu.memory_space<smem>>
      %c1_i32 = arith.constant 1 : i32
      %38 = tpu.dynamic_rotate %33 by %c1_i32 dim 0 : vector<128x1xf32>, i32 -> vector<128x1xf32>
      %c-1_i32 = arith.constant -1 : i32
      %39 = vector.broadcast %c-1_i32 : i32 to vector<128x1xi32>
      %40 = arith.addi %35, %39 : vector<128x1xi32>
      %c0_i32_28 = arith.constant 0 : i32
      %41 = vector.broadcast %c0_i32_28 : i32 to vector<128x1xi32>
      %42 = arith.cmpi sge, %40, %41 : vector<128x1xi32>
      %c-1_i32_29 = arith.constant -1 : i32
      %43 = vector.broadcast %c-1_i32_29 : i32 to vector<128x1xi32>
      %44 = arith.addi %35, %43 : vector<128x1xi32>
      %c64_i32 = arith.constant 64 : i32
      %45 = vector.broadcast %c64_i32 : i32 to vector<128x1xi32>
      %46 = arith.cmpi slt, %44, %45 : vector<128x1xi32>
      %47 = arith.andi %42, %46 : vector<128x1xi1>
      %cst_30 = arith.constant 0.000000e+00 : f32
      %48 = vector.broadcast %cst_30 : f32 to vector<128x1xf32>
      %49 = arith.select %47, %38, %48 : vector<128x1xi1>, vector<128x1xf32>
      %50 = vector.broadcast %37 : f32 to vector<128x1xf32>
      %51 = arith.mulf %50, %49 : vector<128x1xf32>
      %52 = arith.addf %36, %51 : vector<128x1xf32>
      %c4 = arith.constant 4 : index
      %53 = memref.load %arg2[%c4] : memref<6xf32, #tpu.memory_space<smem>>
      %54 = vector.broadcast %53 : f32 to vector<128x1xf32>
      %55 = arith.mulf %54, %33 : vector<128x1xf32>
      %56 = arith.addf %52, %55 : vector<128x1xf32>
      %c5 = arith.constant 5 : index
      %57 = memref.load %arg2[%c5] : memref<6xf32, #tpu.memory_space<smem>>
      %c127_i32 = arith.constant 127 : i32
      %58 = tpu.dynamic_rotate %33 by %c127_i32 dim 0 : vector<128x1xf32>, i32 -> vector<128x1xf32>
      %c1_i32_31 = arith.constant 1 : i32
      %59 = vector.broadcast %c1_i32_31 : i32 to vector<128x1xi32>
      %60 = arith.addi %35, %59 : vector<128x1xi32>
      %c0_i32_32 = arith.constant 0 : i32
      %61 = vector.broadcast %c0_i32_32 : i32 to vector<128x1xi32>
      %62 = arith.cmpi sge, %60, %61 : vector<128x1xi32>
      %c1_i32_33 = arith.constant 1 : i32
      %63 = vector.broadcast %c1_i32_33 : i32 to vector<128x1xi32>
      %64 = arith.addi %35, %63 : vector<128x1xi32>
      %c64_i32_34 = arith.constant 64 : i32
      %65 = vector.broadcast %c64_i32_34 : i32 to vector<128x1xi32>
      %66 = arith.cmpi slt, %64, %65 : vector<128x1xi32>
      %67 = arith.andi %62, %66 : vector<128x1xi1>
      %cst_35 = arith.constant 0.000000e+00 : f32
      %68 = vector.broadcast %cst_35 : f32 to vector<128x1xf32>
      %69 = arith.select %67, %58, %68 : vector<128x1xi1>, vector<128x1xf32>
      %70 = vector.broadcast %57 : f32 to vector<128x1xf32>
      %71 = arith.mulf %70, %69 : vector<128x1xf32>
      %72 = arith.addf %56, %71 : vector<128x1xf32>
      %73 = vector.broadcast %19 : f32 to vector<128x1xf32>
      %74 = arith.addf %72, %73 : vector<128x1xf32>
      %75 = arith.negf %74 : vector<128x1xf32>
      %76 = math.exp %75 : vector<128x1xf32>
      %cst_36 = arith.constant 1.000000e+00 : f32
      %77 = vector.broadcast %cst_36 : f32 to vector<128x1xf32>
      %78 = arith.addf %77, %76 : vector<128x1xf32>
      %79 = arith.divf %77, %78 : vector<128x1xf32>
      %80 = vector.shape_cast %79 : vector<128x1xf32> to vector<2x64x1xf32>
      %c0_37 = arith.constant 0 : index
      %c0_38 = arith.constant 0 : index
      %c0_39 = arith.constant 0 : index
      %81 = vector.load %arg4[%c0_37, %c0_38, %c0_39] : memref<2x64x1xf32, #tpu.memory_space<vmem>>, vector<2x64x1xf32>
      tpu.vector_store %arg4[%c0_37, %c0_38, %c0_39], %80 {strides = array<i32>} : memref<2x64x1xf32, #tpu.memory_space<vmem>>, vector<2x64x1xf32>,
    } else {
    }
    return
  }
  func.func @transform_0(%arg0: i32, %arg1: i32) -> i32 {
    %c0_i32 = arith.constant 0 : i32
    %c0_i32_0 = arith.constant 0 : i32
    return %c0_i32 : i32
  }
  func.func @transform_1(%arg0: i32, %arg1: i32) -> (i32, i32, i32) {
    %c0_i32 = arith.constant 0 : i32
    %c0_i32_0 = arith.constant 0 : i32
    return %arg0, %c0_i32, %arg1 : i32, i32, i32
  }
  func.func @transform_2(%arg0: i32, %arg1: i32) -> (i32, i32, i32) {
    %c0_i32 = arith.constant 0 : i32
    %c0_i32_0 = arith.constant 0 : i32
    %c0_i32_1 = arith.constant 0 : i32
    return %arg0, %c0_i32, %c0_i32_0 : i32, i32, i32
  }
}

</mosaic_0001>

<bundles_post_ra>
// kernel: tpu_custom_call.1
= control target key start
LH: loop header
LB: loop body
LE: loop exit
PB: predicated region body
PF: predicated region fallthrough
CT: control target
= control target key end

     0   :  { %7 = vsyncpa [#allocation6], 0  ;;  %s1588_s0 = inlined_call_operand.hbm [shape: f32[6], index: 0, kind: input, shape index: {}]   ;;  %s1589_s1 = inlined_call_operand.hbm [shape: f32[2,64,256], index: 1, kind: input, shape index: {}]   ;;  %s1590_s2 = inlined_call_operand.vmem [shape: f32[2,64,1], index: 2, kind: output, shape index: {}]  }
   0x1   :  { %8 = vsyncpa [#allocation5], 0  ;;  %s981_s9 = smov [#allocation4]   ;;  %s982_s12 = smov [#allocation7]  }
   0x2   :  { %16 = dma.hbm_to_smem %s1588_s0, 16, %s981_s9, [#allocation6]  }
   0x3   :  { %s22_s13 = sshll.u32 %s982_s12, 4  ;;  %s23_s13 = int_to_ptr.vmem [resolvable:$true] %s22_s13 }
   0x4   :  { %s965_s14 = scalar_lea.vmem %s23_s13, 4096  ;;  %p970_p1 = scmp.lt.s32.totalorder %s23_s13, %s23_s13 }
   0x5   :  { %p966_p0 = scmp.ne.s32.totalorder %s23_s13, %s965_s14  ;;  %p971_p2 = scmp.lt.s32.totalorder %s965_s14, %s965_s14 }
   0x7   :  { %p972_p3 = por %p971_p2, %p970_p1 }
   0x9   :  { %p973_p4 = pnand %p972_p3, %p966_p0 }
   0xb   :  { %976 = shalt.err (!%p973_p4)
}
   0xc   :  { %s983_s15 = smov 256   ;;  %s984_s16 = smov 16  }
   0xd   :  { %28 = dma.hbm_to_vmem [thread:$0]  %s1589_s1, 4096, %s23_s13, [#allocation5], %s983_s15, %s983_s15, %s984_s16  }
   0xe   :  { %977 = dma.done.wait [#allocation6], 16  }
   0xf   :  { %978 = vsyncadd [#allocation6], 4294967280 }
  0x10   :  { %979 = dma.done.wait [#allocation5], 4096  }
  0x11   :  { %980 = vsyncadd [#allocation5], 4294963200 }
  0x12   :  { %35 = sfence }
  0x13   :  { %v1008_v0 = vld [vmem:[#allocation7 + $0x80] sm:$0xff]  ;;  %v1010_v1 = vld [vmem:[#allocation7 + $0x88] sm:$0xff]  ;;  %v1018_v5 = vld [vmem:[#allocation7 + $0xf0] sm:$0xff]  ;;  %vm40_vm0 = vcmask 7168   ;;  %v985_v16 = vmov 0.0   ;;  %v986_v53 = vmov -inf  }
  0x14   :  { %v1012_v2 = vld [vmem:[#allocation7] sm:$0xff]  ;;  %v145_v3 = vadd.f32 %v1010_v1, %v1008_v0  ;;  %v1016_v4 = vld [vmem:[#allocation7 + $0x8] sm:$0xff]  ;;  %v1020_v6 = vld [vmem:[#allocation7 + $0xf8] sm:$0xff]  ;;  %49 = vst.msk [vmem:[#allocation2 + $0x40] sm:$0xff] %vm40_vm0, %v985_v16  ;;  %v242_v52 = vmax.f32 %v1008_v0, %v1010_v1  ;;  %s1150_s0 = sld [smem:[#allocation4]] }
  0x15   :  { %v121_v7 = vadd.f32 %v1016_v4, %v1012_v2  ;;  %v1024_v8 = vld [vmem:[#allocation7 + $0x70] sm:$0xff]  ;;  %v1026_v9 = vld [vmem:[#allocation7 + $0x78] sm:$0xff]  ;;  %v166_v10 = vadd.f32 %v1020_v6, %v1018_v5  ;;  %v1032_v12 = vld [vmem:[#allocation7 + $0x20] sm:$0xff]  ;;  %41 = vst.msk [vmem:[#allocation2] sm:$0xff] %vm40_vm0, %v985_v16  ;;  %v218_v50 = vmax.f32 %v1012_v2, %v1016_v4  ;;  %v263_v51 = vmax.f32 %v1018_v5, %v1020_v6  ;;  %s1153_s1 = sld [smem:[#allocation4 + $0x1]] }
  0x16   :  { %146 = vadd.xlane.f32.xlu1 %v145_v3  ;;  %v142_v11 = vadd.f32 %v1026_v9, %v1024_v8  ;;  %v1034_v13 = vld [vmem:[#allocation7 + $0x28] sm:$0xff]  ;;  %v1036_v14 = vld [vmem:[#allocation7 + $0x10] sm:$0xff]  ;;  %v1038_v15 = vld [vmem:[#allocation7 + $0x18] sm:$0xff]  ;;  %42 = vst.msk [vmem:[#allocation2 + $0x8] sm:$0xff] %vm40_vm0, %v985_v16  ;;  %v239_v49 = vmax.f32 %v1024_v8, %v1026_v9  ;;  %s861_s19 = sld [smem:[#allocation4 + $0x4]] }
  0x17   :  { %122 = vadd.xlane.f32.xlu0 %v121_v7  ;;  %43 = vst.msk [vmem:[#allocation2 + $0x10] sm:$0xff] %vm40_vm0, %v985_v16  ;;  %44 = vst.msk [vmem:[#allocation2 + $0x18] sm:$0xff] %vm40_vm0, %v985_v16  ;;  %v127_v17 = vadd.f32 %v1034_v13, %v1032_v12  ;;  %v124_v18 = vadd.f32 %v1038_v15, %v1036_v14  ;;  %v1060_v19 = vld [vmem:[#allocation7 + $0x40] sm:$0xff]  ;;  %v1062_v20 = vld [vmem:[#allocation7 + $0x48] sm:$0xff]  ;;  %v224_v54 = vmax.f32 %v1032_v12, %v1034_v13  ;;  %s1158_s20 = sld [smem:[#allocation4 + $0x3]] }
  0x18   :  { %45 = vst.msk [vmem:[#allocation2 + $0x20] sm:$0xff] %vm40_vm0, %v985_v16  ;;  %46 = vst.msk [vmem:[#allocation2 + $0x28] sm:$0xff] %vm40_vm0, %v985_v16  ;;  %v1064_v21 = vld [vmem:[#allocation7 + $0x30] sm:$0xff]  ;;  %v1066_v22 = vld [vmem:[#allocation7 + $0x38] sm:$0xff]  ;;  %v133_v23 = vadd.f32 %v1062_v20, %v1060_v19  ;;  %v221_v55 = vmax.f32 %v1036_v14, %v1038_v15  ;;  %v230_v56 = vmax.f32 %v1060_v19, %v1062_v20  ;;  %s1161_s21 = sld [smem:[#allocation4 + $0x5]] }
  0x19   :  { %47 = vst.msk [vmem:[#allocation2 + $0x30] sm:$0xff] %vm40_vm0, %v985_v16  ;;  %48 = vst.msk [vmem:[#allocation2 + $0x38] sm:$0xff] %vm40_vm0, %v985_v16  ;;  %v130_v24 = vadd.f32 %v1066_v22, %v1064_v21  ;;  %v1072_v25 = vld [vmem:[#allocation7 + $0x60] sm:$0xff]  ;;  %v1074_v26 = vld [vmem:[#allocation7 + $0x68] sm:$0xff]  ;;  %v227_v57 = vmax.f32 %v1064_v21, %v1066_v22  ;;  %s1164_s22 = sld [smem:[#allocation4 + $0x2]] }
  0x1a   :  { %50 = vst.msk [vmem:[#allocation2 + $0x48] sm:$0xff] %vm40_vm0, %v985_v16  ;;  %51 = vst.msk [vmem:[#allocation2 + $0x50] sm:$0xff] %vm40_vm0, %v985_v16  ;;  %167 = vadd.xlane.f32.xlu1 %v166_v10  ;;  %v1076_v27 = vld [vmem:[#allocation7 + $0x50] sm:$0xff]  ;;  %v1078_v28 = vld [vmem:[#allocation7 + $0x58] sm:$0xff]  ;;  %v139_v29 = vadd.f32 %v1074_v26, %v1072_v25  ;;  %v236_v58 = vmax.f32 %v1072_v25, %v1074_v26 }
  0x1b   :  { %52 = vst.msk [vmem:[#allocation2 + $0x58] sm:$0xff] %vm40_vm0, %v985_v16  ;;  %53 = vst.msk [vmem:[#allocation2 + $0x60] sm:$0xff] %vm40_vm0, %v985_v16  ;;  %143 = vadd.xlane.f32.xlu0 %v142_v11  ;;  %v136_v30 = vadd.f32 %v1078_v28, %v1076_v27  ;;  %v1084_v31 = vld [vmem:[#allocation7 + $0xa0] sm:$0xff]  ;;  %v1086_v32 = vld [vmem:[#allocation7 + $0xa8] sm:$0xff]  ;;  %v233_v59 = vmax.f32 %v1076_v27, %v1078_v28 }
  0x1c   :  { %54 = vst.msk [vmem:[#allocation2 + $0x68] sm:$0xff] %vm40_vm0, %v985_v16  ;;  %55 = vst.msk [vmem:[#allocation2 + $0x70] sm:$0xff] %vm40_vm0, %v985_v16  ;;  %v1088_v33 = vld [vmem:[#allocation7 + $0x90] sm:$0xff]  ;;  %v1090_v34 = vld [vmem:[#allocation7 + $0x98] sm:$0xff]  ;;  %v151_v35 = vadd.f32 %v1086_v32, %v1084_v31  ;;  %v248_v60 = vmax.f32 %v1084_v31, %v1086_v32 }
  0x1d   :  { %56 = vst.msk [vmem:[#allocation2 + $0x78] sm:$0xff] %vm40_vm0, %v985_v16  ;;  %v148_v36 = vadd.f32 %v1090_v34, %v1088_v33  ;;  %v97_v37 = vld [vmem:[#allocation7 + $0xc0] sm:$0xff]  ;;  %v98_v38 = vld [vmem:[#allocation7 + $0xc8] sm:$0xff]  ;;  %v95_v39 = vld [vmem:[#allocation7 + $0xb0] sm:$0xff]  ;;  %v245_v61 = vmax.f32 %v1088_v33, %v1090_v34 }
  0x1e   :  { %128 = vadd.xlane.f32.xlu1 %v127_v17  ;;  %v96_v40 = vld [vmem:[#allocation7 + $0xb8] sm:$0xff]  ;;  %v157_v41 = vadd.f32 %v98_v38, %v97_v37  ;;  %v101_v43 = vld [vmem:[#allocation7 + $0xe0] sm:$0xff]  ;;  %v102_v44 = vld [vmem:[#allocation7 + $0xe8] sm:$0xff]  ;;  %64 = vst.msk [vmem:[#allocation3 + $0x38] sm:$0xff] %vm40_vm0, %v986_v53  ;;  %v254_v62 = vmax.f32 %v97_v37, %v98_v38 }
  0x1f   :  { %125 = vadd.xlane.f32.xlu0 %v124_v18  ;;  %v154_v42 = vadd.f32 %v96_v40, %v95_v39  ;;  %v99_v45 = vld [vmem:[#allocation7 + $0xd0] sm:$0xff]  ;;  %v100_v46 = vld [vmem:[#allocation7 + $0xd8] sm:$0xff]  ;;  %v163_v47 = vadd.f32 %v102_v44, %v101_v43  ;;  %57 = vst.msk [vmem:[#allocation3] sm:$0xff] %vm40_vm0, %v986_v53  ;;  %58 = vst.msk [vmem:[#allocation3 + $0x8] sm:$0xff] %vm40_vm0, %v986_v53  ;;  %v251_v63 = vmax.f32 %v95_v39, %v96_v40 }
  0x20   :  { %v160_v48 = vadd.f32 %v100_v46, %v99_v45  ;;  %59 = vst.msk [vmem:[#allocation3 + $0x10] sm:$0xff] %vm40_vm0, %v986_v53  ;;  %60 = vst.msk [vmem:[#allocation3 + $0x18] sm:$0xff] %vm40_vm0, %v986_v53  ;;  %v260_v0 = vmax.f32 %v101_v43, %v102_v44  ;;  %v257_v1 = vmax.f32 %v99_v45, %v100_v46  ;;  %v113_v2 = vld [vmem:[#allocation2 + $0x40] sm:$0xff]  ;;  %v112_v9 = vld [vmem:[#allocation2 + $0x38] sm:$0xff] }
  0x21   :  { %61 = vst.msk [vmem:[#allocation3 + $0x20] sm:$0xff] %vm40_vm0, %v986_v53  ;;  %62 = vst.msk [vmem:[#allocation3 + $0x28] sm:$0xff] %vm40_vm0, %v986_v53  ;;  %v105_v3 = vld [vmem:[#allocation2] sm:$0xff]  ;;  %v107_v14 = vld [vmem:[#allocation2 + $0x10] sm:$0xff] }
  0x22   :  { %134 = vadd.xlane.f32.xlu1 %v133_v23  ;;  %63 = vst.msk [vmem:[#allocation3 + $0x30] sm:$0xff] %vm40_vm0, %v986_v53  ;;  %65 = vst.msk [vmem:[#allocation3 + $0x40] sm:$0xff] %vm40_vm0, %v986_v53  ;;  %v106_v15 = vld [vmem:[#allocation2 + $0x8] sm:$0xff]  ;;  %v109_v20 = vld [vmem:[#allocation2 + $0x20] sm:$0xff] }
  0x23   :  { %131 = vadd.xlane.f32.xlu0 %v130_v24  ;;  %66 = vst.msk [vmem:[#allocation3 + $0x48] sm:$0xff] %vm40_vm0, %v986_v53  ;;  %67 = vst.msk [vmem:[#allocation3 + $0x50] sm:$0xff] %vm40_vm0, %v986_v53  ;;  %v108_v21 = vld [vmem:[#allocation2 + $0x18] sm:$0xff]  ;;  %v111_v26 = vld [vmem:[#allocation2 + $0x30] sm:$0xff] }
  0x24   :  { %68 = vst.msk [vmem:[#allocation3 + $0x58] sm:$0xff] %vm40_vm0, %v986_v53  ;;  %69 = vst.msk [vmem:[#allocation3 + $0x60] sm:$0xff] %vm40_vm0, %v986_v53  ;;  %v120_v8 = vld [vmem:[#allocation2 + $0x78] sm:$0xff]  ;;  %v110_v27 = vld [vmem:[#allocation2 + $0x28] sm:$0xff] }
  0x25   :  { %70 = vst.msk [vmem:[#allocation3 + $0x68] sm:$0xff] %vm40_vm0, %v986_v53  ;;  %71 = vst.msk [vmem:[#allocation3 + $0x70] sm:$0xff] %vm40_vm0, %v986_v53  ;;  %v115_v32 = vld [vmem:[#allocation2 + $0x50] sm:$0xff]  ;;  %v114_v33 = vld [vmem:[#allocation2 + $0x48] sm:$0xff] }
  0x26   :  { %140 = vadd.xlane.f32.xlu1 %v139_v29  ;;  %72 = vst.msk [vmem:[#allocation3 + $0x78] sm:$0xff] %vm40_vm0, %v986_v53  ;;  %v117_v38 = vld [vmem:[#allocation2 + $0x60] sm:$0xff]  ;;  %v116_v39 = vld [vmem:[#allocation2 + $0x58] sm:$0xff]  ;;  %v119_v44 = vld [vmem:[#allocation2 + $0x70] sm:$0xff] }
  0x27   :  { %137 = vadd.xlane.f32.xlu0 %v136_v30  ;;  %v118_v45 = vld [vmem:[#allocation2 + $0x68] sm:$0xff] }
  0x2a   :  { %152 = vadd.xlane.f32.xlu1 %v151_v35 }
  0x2b   :  { %149 = vadd.xlane.f32.xlu0 %v148_v36 }
  0x2e   :  { %158 = vadd.xlane.f32.xlu1 %v157_v41 }
  0x2f   :  { %155 = vadd.xlane.f32.xlu0 %v154_v42 }
  0x32   :  { %164 = vadd.xlane.f32.xlu1 %v163_v47 }
  0x33   :  { %161 = vadd.xlane.f32.xlu0 %v160_v48 }
  0x36   :  { %240 = vmax.xlane.f32.xlu1 %v239_v49 }
  0x37   :  { %219 = vmax.xlane.f32.xlu0 %v218_v50  ;;  %v209_v50 = vld [vmem:[#allocation3 + $0x38] sm:$0xff] }
  0x3a   :  { %264 = vmax.xlane.f32.xlu1 %v263_v51  ;;  %v450_v51 = vlaneseq }
  0x3b   :  { %243 = vmax.xlane.f32.xlu0 %v242_v52  ;;  %v202_v52 = vld [vmem:[#allocation3] sm:$0xff] }
  0x3e   :  { %225 = vmax.xlane.f32.xlu1 %v224_v54 }
  0x3f   :  { %222 = vmax.xlane.f32.xlu0 %v221_v55 }
  0x42   :  { %231 = vmax.xlane.f32.xlu1 %v230_v56 }
  0x43   :  { %228 = vmax.xlane.f32.xlu0 %v227_v57  ;;  %v1156_v57 = vshrl.u32 %v450_v51, 7 }
  0x45   :  { %vm476_vm1 = vcmp.lt.s32.totalorder %v1156_v57, 1  ;;  %vm625_vm3 = vcmp.lt.s32.totalorder %v1156_v57, 7 }
  0x46   :  { %237 = vmax.xlane.f32.xlu1 %v236_v58  ;;  %v217_v58 = vld [vmem:[#allocation3 + $0x78] sm:$0xff] }
  0x47   :  { %234 = vmax.xlane.f32.xlu0 %v233_v59  ;;  %v210_v59 = vld [vmem:[#allocation3 + $0x40] sm:$0xff] }
  0x4a   :  { %249 = vmax.xlane.f32.xlu1 %v248_v60 }
  0x4b   :  { %246 = vmax.xlane.f32.xlu0 %v245_v61 }
  0x4e   :  { %255 = vmax.xlane.f32.xlu1 %v254_v62 }
  0x4f   :  { %252 = vmax.xlane.f32.xlu0 %v251_v63 }
  0x52   :  { %261 = vmax.xlane.f32.xlu1 %v260_v0 }
  0x53   :  { %258 = vmax.xlane.f32.xlu0 %v257_v1  ;;  %v458_v1 = vadd.s32 56, %v1156_v57 }
  0x9f   :  { %v147_v4 = vpop.xlane.xlu1 %146 }
  0xa0   :  { %v177_v5 = vadd.f32 %v147_v4, %v113_v2  ;;  %v123_v6 = vpop.xlane.xlu0 %122 }
  0xa1   :  { %v169_v7 = vadd.f32 %v123_v6, %v105_v3  ;;  %v204_v3 = vld [vmem:[#allocation3 + $0x10] sm:$0xff]  ;;  %v1169_v6 = vstv %s1150_s0 }
  0xa2   :  { %194 = vst.msk [vmem:[#allocation2 + $0x40] sm:$0xff] %vm40_vm0, %v177_v5  ;;  %v203_v5 = vld [vmem:[#allocation3 + $0x8] sm:$0xff] }
  0xa3   :  { %186 = vst.msk [vmem:[#allocation2] sm:$0xff] %vm40_vm0, %v169_v7  ;;  %v168_v10 = vpop.xlane.xlu1 %167 }
  0xa4   :  { %v184_v11 = vadd.f32 %v168_v10, %v120_v8  ;;  %v144_v12 = vpop.xlane.xlu0 %143  ;;  %v1172_v10 = vstv %s1153_s1 }
  0xa5   :  { %v176_v13 = vadd.f32 %v144_v12, %v112_v9 }
  0xa6   :  { %201 = vst.msk [vmem:[#allocation2 + $0x78] sm:$0xff] %vm40_vm0, %v184_v11  ;;  %v1174_v11 = vstv %s861_s19 }
  0xa7   :  { %193 = vst.msk [vmem:[#allocation2 + $0x38] sm:$0xff] %vm40_vm0, %v176_v13  ;;  %v129_v16 = vpop.xlane.xlu1 %128 }
  0xa8   :  { %v171_v17 = vadd.f32 %v129_v16, %v107_v14  ;;  %v126_v18 = vpop.xlane.xlu0 %125  ;;  %v1178_v16 = vadd.s32 4294967295, %v1156_v57 }
  0xa9   :  { %v170_v19 = vadd.f32 %v126_v18, %v106_v15  ;;  %v312_v63 = vld [vmem:[#allocation2 + $0x40] sm:$0xff] }
  0xaa   :  { %188 = vst.msk [vmem:[#allocation2 + $0x10] sm:$0xff] %vm40_vm0, %v171_v17  ;;  %v304_v4 = vld [vmem:[#allocation2] sm:$0xff]  ;;  %v328_v13 = vmul.f32 0.00390625, %v312_v63  ;;  %vm501_vm2 = vcmp.ge.s32.totalorder %v1178_v16, 0 }
  0xab   :  { %187 = vst.msk [vmem:[#allocation2 + $0x8] sm:$0xff] %vm40_vm0, %v170_v19  ;;  %v135_v22 = vpop.xlane.xlu1 %134  ;;  %v320_v19 = vmul.f32 0.00390625, %v304_v4 }
  0xac   :  { %v173_v23 = vadd.f32 %v135_v22, %v109_v20  ;;  %v132_v24 = vpop.xlane.xlu0 %131  ;;  %v1181_v22 = vstv %s1158_s20 }
  0xad   :  { %v172_v25 = vadd.f32 %v132_v24, %v108_v21  ;;  %v319_v7 = vld [vmem:[#allocation2 + $0x78] sm:$0xff] }
  0xae   :  { %190 = vst.msk [vmem:[#allocation2 + $0x20] sm:$0xff] %vm40_vm0, %v173_v23  ;;  %v311_v0 = vld [vmem:[#allocation2 + $0x38] sm:$0xff]  ;;  %v1183_v23 = vadd.s32 1, %v458_v1 }
  0xaf   :  { %189 = vst.msk [vmem:[#allocation2 + $0x18] sm:$0xff] %vm40_vm0, %v172_v25  ;;  %v141_v28 = vpop.xlane.xlu1 %140  ;;  %v327_v14 = vmul.f32 0.00390625, %v311_v0  ;;  %v206_v25 = vld [vmem:[#allocation3 + $0x20] sm:$0xff] }
  0xb0   :  { %v175_v29 = vadd.f32 %v141_v28, %v111_v26  ;;  %v138_v30 = vpop.xlane.xlu0 %137  ;;  %v335_v26 = vmul.f32 0.00390625, %v319_v7  ;;  %vm665_vm4 = vcmp.lt.s32.totalorder %v1183_v23, 64 }
  0xb1   :  { %v174_v31 = vadd.f32 %v138_v30, %v110_v27  ;;  %v306_v8 = vld [vmem:[#allocation2 + $0x10] sm:$0xff] }
  0xb2   :  { %192 = vst.msk [vmem:[#allocation2 + $0x30] sm:$0xff] %vm40_vm0, %v175_v29  ;;  %v305_v9 = vld [vmem:[#allocation2 + $0x8] sm:$0xff]  ;;  %v1185_v27 = vmul.f32 0.00390625, %v306_v8 }
  0xb3   :  { %191 = vst.msk [vmem:[#allocation2 + $0x28] sm:$0xff] %vm40_vm0, %v174_v31  ;;  %v153_v34 = vpop.xlane.xlu1 %152  ;;  %v1187_v28 = vmul.f32 0.00390625, %v305_v9  ;;  %v205_v31 = vld [vmem:[#allocation3 + $0x18] sm:$0xff] }
  0xb4   :  { %v179_v35 = vadd.f32 %v153_v34, %v115_v32  ;;  %v150_v36 = vpop.xlane.xlu0 %149  ;;  %v1193_v34 = vstv %s1161_s21 }
  0xb5   :  { %v178_v37 = vadd.f32 %v150_v36, %v114_v33  ;;  %v308_v15 = vld [vmem:[#allocation2 + $0x20] sm:$0xff] }
  0xb6   :  { %196 = vst.msk [vmem:[#allocation2 + $0x50] sm:$0xff] %vm40_vm0, %v179_v35  ;;  %v307_v20 = vld [vmem:[#allocation2 + $0x18] sm:$0xff]  ;;  %v1190_v32 = vmul.f32 0.00390625, %v308_v15  ;;  %v1196_v35 = vstv %s1164_s22 }
  0xb7   :  { %195 = vst.msk [vmem:[#allocation2 + $0x48] sm:$0xff] %vm40_vm0, %v178_v37  ;;  %v159_v40 = vpop.xlane.xlu1 %158  ;;  %v393_v37 = vmul.f32 %v1169_v6, %v328_v13 }
  0xb8   :  { %v181_v41 = vadd.f32 %v159_v40, %v117_v38  ;;  %v156_v42 = vpop.xlane.xlu0 %155  ;;  %v1200_v38 = vmul.f32 0.00390625, %v307_v20  ;;  %v211_v20 = vld [vmem:[#allocation3 + $0x48] sm:$0xff] }
  0xb9   :  { %v180_v43 = vadd.f32 %v156_v42, %v116_v39  ;;  %v385_v42 = vmul.f32 %v1169_v6, %v320_v19  ;;  %v310_v51 = vld [vmem:[#allocation2 + $0x30] sm:$0xff] }
  0xba   :  { %198 = vst.msk [vmem:[#allocation2 + $0x60] sm:$0xff] %vm40_vm0, %v181_v41  ;;  %v1228_v4 = vmul.f32 0.00390625, %v310_v51 }
  0xbb   :  { %197 = vst.msk [vmem:[#allocation2 + $0x58] sm:$0xff] %vm40_vm0, %v180_v43  ;;  %v165_v46 = vpop.xlane.xlu1 %164  ;;  %v392_v43 = vmul.f32 %v1169_v6, %v327_v14 }
  0xbc   :  { %v183_v47 = vadd.f32 %v165_v46, %v119_v44  ;;  %v162_v48 = vpop.xlane.xlu0 %161 }
  0xbd   :  { %v182_v49 = vadd.f32 %v162_v48, %v118_v45  ;;  %v400_v48 = vmul.f32 %v1169_v6, %v335_v26  ;;  %v314_v63 = vld [vmem:[#allocation2 + $0x50] sm:$0xff] }
  0xbe   :  { %200 = vst.msk [vmem:[#allocation2 + $0x70] sm:$0xff] %vm40_vm0, %v183_v47  ;;  %v208_v47 = vld [vmem:[#allocation3 + $0x30] sm:$0xff] }
  0xbf   :  { %199 = vst.msk [vmem:[#allocation2 + $0x68] sm:$0xff] %vm40_vm0, %v182_v49  ;;  %v241_v53 = vpop.xlane.xlu1 %240  ;;  %v1208_v49 = vmul.f32 %v1169_v6, %v1185_v27 }
  0xc0   :  { %v273_v54 = vmax.f32 %v209_v50, %v241_v53  ;;  %v220_v55 = vpop.xlane.xlu0 %219  ;;  %v1212_v50 = vmul.f32 %v1169_v6, %v1187_v28 }
  0xc1   :  { %v266_v56 = vmax.f32 %v202_v52, %v220_v55  ;;  %v1219_v55 = vmul.f32 %v1169_v6, %v1190_v32 }
  0xc2   :  { %289 = vst.msk [vmem:[#allocation3 + $0x38] sm:$0xff] %vm40_vm0, %v273_v54  ;;  %v207_v54 = vld [vmem:[#allocation3 + $0x28] sm:$0xff] }
  0xc3   :  { %282 = vst.msk [vmem:[#allocation3] sm:$0xff] %vm40_vm0, %v266_v56  ;;  %v265_v60 = vpop.xlane.xlu1 %264  ;;  %v309_v56 = vld [vmem:[#allocation2 + $0x28] sm:$0xff] }
  0xc4   :  { %v281_v61 = vmax.f32 %v217_v58, %v265_v60  ;;  %v244_v62 = vpop.xlane.xlu0 %243 }
  0xc5   :  { %v274_v2 = vmax.f32 %v210_v59, %v244_v62  ;;  %v1225_v62 = vmul.f32 %v1169_v6, %v1200_v38 }
  0xc6   :  { %297 = vst.msk [vmem:[#allocation3 + $0x78] sm:$0xff] %vm40_vm0, %v281_v61 }
  0xc7   :  { %290 = vst.msk [vmem:[#allocation3 + $0x40] sm:$0xff] %vm40_vm0, %v274_v2  ;;  %v226_v12 = vpop.xlane.xlu1 %225 }
  0xc8   :  { %v268_v17 = vmax.f32 %v204_v3, %v226_v12  ;;  %v223_v18 = vpop.xlane.xlu0 %222 }
  0xc9   :  { %v343_v21 = vld [vmem:[#allocation3 + $0x38] sm:$0xff]  ;;  %v267_v24 = vmax.f32 %v203_v5, %v223_v18  ;;  %v313_v5 = vld [vmem:[#allocation2 + $0x48] sm:$0xff] }
  0xca   :  { %v359_v29 = vadd.f32 %v343_v21, %v327_v14  ;;  %v336_v30 = vld [vmem:[#allocation3] sm:$0xff]  ;;  %284 = vst.msk [vmem:[#allocation3 + $0x10] sm:$0xff] %vm40_vm0, %v268_v17  ;;  %v425_v7 = vmul.f32 %v1172_v10, %v343_v21 }
  0xcb   :  { %v352_v33 = vadd.f32 %v336_v30, %v320_v19  ;;  %283 = vst.msk [vmem:[#allocation3 + $0x8] sm:$0xff] %vm40_vm0, %v267_v24  ;;  %v232_v36 = vpop.xlane.xlu1 %231  ;;  %v418_v0 = vmul.f32 %v1172_v10, %v336_v30  ;;  %v212_v19 = vld [vmem:[#allocation3 + $0x50] sm:$0xff]  ;;  %v1237_v24 = vmul.f32 0.00390625, %v314_v63  ;;  %v1243_v30 = vmul.f32 0.00390625, %v313_v5 }
  0xcc   :  { %v375_v39 = vmul.f32 0.5, %v359_v29  ;;  %v270_v40 = vmax.f32 %v206_v25, %v232_v36  ;;  %v229_v41 = vpop.xlane.xlu0 %228 }
  0xcd   :  { %v368_v44 = vmul.f32 0.5, %v352_v33  ;;  %v351_v45 = vld [vmem:[#allocation3 + $0x78] sm:$0xff]  ;;  %v269_v46 = vmax.f32 %v205_v31, %v229_v41 }
  0xce   :  { %v367_v52 = vadd.f32 %v351_v45, %v335_v26  ;;  %v344_v53 = vld [vmem:[#allocation3 + $0x40] sm:$0xff]  ;;  %286 = vst.msk [vmem:[#allocation3 + $0x20] sm:$0xff] %vm40_vm0, %v270_v40  ;;  %v408_v58 = vadd.f32 %v392_v43, %v375_v39  ;;  %v433_v17 = vmul.f32 %v1172_v10, %v351_v45  ;;  %v1251_v40 = vmul.f32 %v1169_v6, %v1228_v4 }
  0xcf   :  { %v401_v59 = vadd.f32 %v385_v42, %v368_v44  ;;  %v360_v60 = vadd.f32 %v344_v53, %v328_v13  ;;  %285 = vst.msk [vmem:[#allocation3 + $0x18] sm:$0xff] %vm40_vm0, %v269_v46  ;;  %v238_v61 = vpop.xlane.xlu1 %237  ;;  %v1231_v13 = vmul.f32 0.00390625, %v309_v56  ;;  %v426_v26 = vmul.f32 %v1172_v10, %v344_v53  ;;  %v316_v45 = vld [vmem:[#allocation2 + $0x60] sm:$0xff] }
  0xd0   :  { %v383_v1 = vmul.f32 0.5, %v367_v52  ;;  %v272_v2 = vmax.f32 %v208_v47, %v238_v61  ;;  %v235_v3 = vpop.xlane.xlu0 %234  ;;  %v1239_v25 = vadd.f32 %v425_v7, %v408_v58  ;;  %v1263_v47 = vmul.f32 %v1169_v6, %v1237_v24 }
  0xd1   :  { %v376_v8 = vmul.f32 0.5, %v360_v60  ;;  %v338_v9 = vld [vmem:[#allocation3 + $0x10] sm:$0xff]  ;;  %v271_v12 = vmax.f32 %v207_v54, %v235_v3  ;;  %v1233_v14 = vadd.f32 %v418_v0, %v401_v59  ;;  %v1257_v44 = vmul.f32 %v1169_v6, %v1231_v13 }
  0xd2   :  { %v416_v15 = vadd.f32 %v400_v48, %v383_v1  ;;  %v337_v18 = vld [vmem:[#allocation3 + $0x8] sm:$0xff]  ;;  %288 = vst.msk [vmem:[#allocation3 + $0x30] sm:$0xff] %vm40_vm0, %v272_v2  ;;  %v354_v33 = vadd.f32 %v338_v9, %v1185_v27  ;;  %v315_v48 = vld [vmem:[#allocation2 + $0x58] sm:$0xff]  ;;  %v616_v51 = vrot.slane %v1239_v25, 1  ;;  %v1271_v54 = vmul.f32 %v1169_v6, %v1243_v30 }
  0xd3   :  { %v409_v21 = vadd.f32 %v393_v37, %v376_v8  ;;  %287 = vst.msk [vmem:[#allocation3 + $0x28] sm:$0xff] %vm40_vm0, %v271_v12  ;;  %v250_v29 = vpop.xlane.xlu1 %249  ;;  %v353_v36 = vadd.f32 %v337_v18, %v1187_v28  ;;  %v460_v46 = vrot.slane %v1233_v14, 7  ;;  %v1279_v60 = vmul.f32 0.00390625, %v316_v45 }
  0xd4   :  { %v1245_v31 = vadd.f32 %v433_v17, %v416_v15  ;;  %v247_v39 = vpop.xlane.xlu0 %246  ;;  %v276_v42 = vmax.f32 %v212_v19, %v250_v29  ;;  %v370_v28 = vmul.f32 0.5, %v354_v33  ;;  %v420_v0 = vmul.f32 %v1172_v10, %v338_v9 }
  0xd5   :  { %v1253_v41 = vadd.f32 %v426_v26, %v409_v21  ;;  %v340_v37 = vld [vmem:[#allocation3 + $0x20] sm:$0xff]  ;;  %v275_v43 = vmax.f32 %v211_v20, %v247_v39  ;;  %v369_v53 = vmul.f32 0.5, %v353_v36  ;;  %v1290_v2 = vmul.f32 0.00390625, %v315_v48 }
  0xd6   :  { %v475_v27 = vrot.slane %v1245_v31, 7  ;;  %292 = vst.msk [vmem:[#allocation3 + $0x50] sm:$0xff] %vm40_vm0, %v276_v42  ;;  %v403_v58 = vadd.f32 %v1208_v49, %v370_v28  ;;  %v356_v59 = vadd.f32 %v340_v37, %v1190_v32  ;;  %v339_v1 = vld [vmem:[#allocation3 + $0x18] sm:$0xff]  ;;  %v467_v49 = vrot.slane %v1239_v25, 7 }
  0xd7   :  { %v617_v52 = vrot.slane %v1253_v41, 1  ;;  %291 = vst.msk [vmem:[#allocation3 + $0x48] sm:$0xff] %vm40_vm0, %v275_v43  ;;  %v1295_v32 = vmul.f32 %v1174_v11, %v1239_v25  ;;  %v576_v5 = vmul.f32 %v1174_v11, %v1233_v14  ;;  %v402_v9 = vadd.f32 %v1212_v50, %v369_v53 }
  0xd8   :  { %v492_v56 = vsel %vm476_vm1, %v475_v27, %v460_v46  ;;  %v436_v8 = vadd.f32 %v420_v0, %v403_v58  ;;  %v609_v12 = vrot.slane %v1233_v14, 1  ;;  %v419_v15 = vmul.f32 %v1172_v10, %v337_v18 }
  0xd9   :  { %v525_v61 = vsel %vm501_vm2, %v492_v56, 0.0  ;;  %v633_v63 = vsel %vm625_vm3, %v616_v51, %v617_v52  ;;  %v372_v17 = vmul.f32 0.5, %v356_v59  ;;  %v355_v19 = vadd.f32 %v339_v1, %v1200_v38  ;;  %v342_v20 = vld [vmem:[#allocation3 + $0x30] sm:$0xff] }
  0xda   :  { %v681_v3 = vsel %vm665_vm4, %v633_v63, 0.0  ;;  %v542_v7 = vmul.f32 %v1181_v22, %v525_v61  ;;  %v468_v21 = vrot.slane %v1253_v41, 7  ;;  %v462_v29 = vrot.slane %v436_v8, 7  ;;  %v341_v36 = vld [vmem:[#allocation3 + $0x28] sm:$0xff] }
  0xdb   :  { %v1308_v26 = vmul.f32 %v1193_v34, %v681_v3  ;;  %v422_v33 = vmul.f32 %v1172_v10, %v340_v37  ;;  %v611_v39 = vrot.slane %v436_v8, 1  ;;  %v435_v42 = vadd.f32 %v419_v15, %v402_v9 }
  0xdc   :  { %v405_v50 = vadd.f32 %v1219_v55, %v372_v17  ;;  %v371_v43 = vmul.f32 0.5, %v355_v19  ;;  %v592_v45 = vadd.f32 %v576_v5, %v542_v7  ;;  %v578_v18 = vmul.f32 %v1174_v11, %v436_v8 }
  0xdd   :  { %v421_v38 = vmul.f32 %v1172_v10, %v339_v1  ;;  %v358_v28 = vadd.f32 %v342_v20, %v1228_v4  ;;  %v461_v48 = vrot.slane %v435_v42, 7  ;;  %v610_v53 = vrot.slane %v435_v42, 1  ;;  %v1321_v63 = vld [vmem:[#allocation3 + $0x50] sm:$0xff] }
  0xde   :  { %v1315_v56 = vadd.f32 %v422_v33, %v405_v50  ;;  %v357_v58 = vadd.f32 %v341_v36, %v1231_v13  ;;  %v404_v37 = vadd.f32 %v1225_v62, %v371_v43  ;;  %v424_v61 = vmul.f32 %v1172_v10, %v342_v20 }
  0xdf   :  { %v374_v59 = vmul.f32 0.5, %v358_v28  ;;  %v423_v55 = vmul.f32 %v1172_v10, %v341_v36  ;;  %v490_v0 = vsel %vm476_vm1, %v461_v48, %v462_v29  ;;  %v491_v4 = vsel %vm476_vm1, %v460_v46, %v461_v48 }
  0xe0   :  { %v639_v1 = vsel %vm625_vm3, %v610_v53, %v611_v39  ;;  %v640_v62 = vsel %vm625_vm3, %v609_v12, %v610_v53  ;;  %v543_v13 = vmul.f32 %v1181_v22, %v491_v4  ;;  %v544_v3 = vmul.f32 %v1181_v22, %v490_v0 }
  0xe1   :  { %v577_v5 = vmul.f32 %v1174_v11, %v435_v42  ;;  %v691_v7 = vmul.f32 %v1193_v34, %v640_v62  ;;  %v613_v8 = vrot.slane %v1315_v56, 1  ;;  %v437_v9 = vadd.f32 %v421_v38, %v404_v37 }
  0xe2   :  { %v373_v46 = vmul.f32 0.5, %v357_v58  ;;  %v362_v15 = vadd.f32 %v1321_v63, %v1237_v24  ;;  %v692_v19 = vmul.f32 %v1193_v34, %v639_v1  ;;  %v407_v33 = vadd.f32 %v1251_v40, %v374_v59 }
  0xe3   :  { %v593_v17 = vadd.f32 %v577_v5, %v543_v13  ;;  %v707_v20 = vadd.f32 %v691_v7, %v592_v45  ;;  %v464_v36 = vrot.slane %v1315_v56, 7  ;;  %v580_v42 = vmul.f32 %v1174_v11, %v1315_v56 }
  0xe4   :  { %v463_v50 = vrot.slane %v437_v9, 7  ;;  %v612_v43 = vrot.slane %v437_v9, 1  ;;  %v594_v28 = vadd.f32 %v578_v18, %v544_v3  ;;  %v440_v53 = vadd.f32 %v424_v61, %v407_v33 }
  0xe5   :  { %v708_v48 = vadd.f32 %v692_v19, %v593_v17  ;;  %v724_v38 = vadd.f32 %v1196_v35, %v707_v20  ;;  %v406_v58 = vadd.f32 %v1257_v44, %v373_v46  ;;  %v579_v59 = vmul.f32 %v1174_v11, %v437_v9 }
  0xe6   :  { %v489_v24 = vsel %vm476_vm1, %v462_v29, %v463_v50  ;;  %v637_v45 = vsel %vm625_vm3, %v612_v43, %v613_v8  ;;  %v638_v40 = vsel %vm625_vm3, %v611_v39, %v612_v43  ;;  %v488_v61 = vsel %vm476_vm1, %v463_v50, %v464_v36 }
  0xe7   :  { %v725_v56 = vadd.f32 %v1196_v35, %v708_v48  ;;  %v863_v37 = vmul.f32 -1.442695, %v724_v38  ;;  %v545_v18 = vmul.f32 %v1181_v22, %v489_v24  ;;  %v693_v29 = vmul.f32 %v1193_v34, %v638_v40  ;;  %v253_v48 = vpop.xlane.xlu0 %252 }
  0xe8   :  { %v466_v0 = vrot.slane %v440_v53, 7  ;;  %v378_v4 = vmul.f32 0.5, %v362_v15  ;;  %v694_v39 = vmul.f32 %v1193_v34, %v637_v45  ;;  %v615_v3 = vrot.slane %v440_v53, 1 }
  0xe9   :  { %885 = vpow2.f32 %v863_v37  ;;  %v864_v1 = vmul.f32 -1.442695, %v725_v56  ;;  %v595_v62 = vadd.f32 %v579_v59, %v545_v18  ;;  %v709_v44 = vadd.f32 %v693_v29, %v594_v28  ;;  %v256_v28 = vpop.xlane.xlu1 %255  ;;  %v345_v18 = vld [vmem:[#allocation3 + $0x48] sm:$0xff] }
  0xea   :  { %v485_v13 = vsel %vm476_vm1, %v466_v0, %v467_v49  ;;  %v439_v5 = vadd.f32 %v423_v55, %v406_v58  ;;  %v546_v7 = vmul.f32 %v1181_v22, %v488_v61  ;;  %v582_v17 = vmul.f32 %v1174_v11, %v440_v53 }
  0xeb   :  { %887 = vpow2.f32 %v864_v1  ;;  %v710_v9 = vadd.f32 %v694_v39, %v595_v62  ;;  %v549_v46 = vmul.f32 %v1181_v22, %v485_v13  ;;  %v726_v15 = vadd.f32 %v1196_v35, %v709_v44  ;;  %v213_v62 = vld [vmem:[#allocation3 + $0x58] sm:$0xff] }
  0xec   :  { %v465_v19 = vrot.slane %v439_v5, 7  ;;  %v411_v20 = vadd.f32 %v1263_v47, %v378_v4  ;;  %v634_v55 = vsel %vm625_vm3, %v615_v3, %v616_v51  ;;  %v614_v43 = vrot.slane %v439_v5, 1 }
  0xed   :  { %v727_v33 = vadd.f32 %v1196_v35, %v710_v9  ;;  %v599_v50 = vadd.f32 %v1295_v32, %v549_v46  ;;  %v865_v38 = vmul.f32 -1.442695, %v726_v15  ;;  %v581_v47 = vmul.f32 %v1174_v11, %v439_v5  ;;  %v259_v5 = vpop.xlane.xlu0 %258  ;;  %v318_v9 = vld [vmem:[#allocation2 + $0x70] sm:$0xff] }
  0xee   :  { %v486_v24 = vsel %vm476_vm1, %v465_v19, %v466_v0  ;;  %v487_v53 = vsel %vm476_vm1, %v464_v36, %v465_v19  ;;  %v697_v51 = vmul.f32 %v1193_v34, %v634_v55  ;;  %v635_v56 = vsel %vm625_vm3, %v614_v43, %v615_v3  ;;  %v216_v3 = vld [vmem:[#allocation3 + $0x70] sm:$0xff] }
  0xef   :  { %v866_v45 = vmul.f32 -1.442695, %v727_v33  ;;  %v714_v32 = vadd.f32 %v1308_v26, %v599_v50  ;;  %v547_v40 = vmul.f32 %v1181_v22, %v487_v53  ;;  %v548_v58 = vmul.f32 %v1181_v22, %v486_v24  ;;  %v214_v26 = vld [vmem:[#allocation3 + $0x60] sm:$0xff]  ;;  %v317_v24 = vld [vmem:[#allocation2 + $0x68] sm:$0xff] }
  0xf0   :  { %889 = vpow2.f32 %v865_v38  ;;  %v636_v37 = vsel %vm625_vm3, %v613_v8, %v614_v43  ;;  %v596_v29 = vadd.f32 %v580_v42, %v546_v7  ;;  %v696_v4 = vmul.f32 %v1193_v34, %v635_v56  ;;  %v262_v42 = vpop.xlane.xlu1 %261  ;;  %v215_v7 = vld [vmem:[#allocation3 + $0x68] sm:$0xff] }
  0xf1   :  { %891 = vpow2.f32 %v866_v45  ;;  %v731_v36 = vadd.f32 %v1196_v35, %v714_v32  ;;  %v597_v59 = vadd.f32 %v581_v47, %v547_v40  ;;  %v598_v61 = vadd.f32 %v582_v17, %v548_v58 }
  0xf2   :  { %v695_v0 = vmul.f32 %v1193_v34, %v636_v37  ;;  %v428_v1 = vmul.f32 %v1172_v10, %v1321_v63  ;;  %v484_v8 = vsel %vm476_vm1, %v467_v49, %v468_v21  ;;  %v361_v13 = vadd.f32 %v345_v18, %v1243_v30 }
  0xf3   :  { %v870_v39 = vmul.f32 -1.442695, %v731_v36  ;;  %v713_v44 = vadd.f32 %v697_v51, %v598_v61  ;;  %v712_v15 = vadd.f32 %v696_v4, %v597_v59  ;;  %v278_v17 = vmax.f32 %v214_v26, %v256_v28 }
  0xf4   :  { %v711_v46 = vadd.f32 %v695_v0, %v596_v29  ;;  %v1400_v63 = vadd.f32 %v428_v1, %v411_v20  ;;  %v377_v19 = vmul.f32 0.5, %v361_v13  ;;  %v277_v33 = vmax.f32 %v213_v62, %v253_v48 }
  0xf5   :  { %893 = vpow2.f32 %v870_v39  ;;  %v730_v25 = vadd.f32 %v1196_v35, %v713_v44  ;;  %v729_v30 = vadd.f32 %v1196_v35, %v712_v15  ;;  %294 = vst.msk [vmem:[#allocation3 + $0x60] sm:$0xff] %vm40_vm0, %v278_v17  ;;  %v280_v55 = vmax.f32 %v216_v3, %v262_v42 }
  0xf6   :  { %v886_v49 = vpop.eup %885  ;;  %v728_v50 = vadd.f32 %v1196_v35, %v711_v46  ;;  %v279_v43 = vmax.f32 %v215_v7, %v259_v5  ;;  %v334_v38 = vmul.f32 0.00390625, %v318_v9  ;;  %v410_v20 = vadd.f32 %v1271_v54, %v377_v19  ;;  %293 = vst.msk [vmem:[#allocation3 + $0x58] sm:$0xff] %vm40_vm0, %v277_v33 }
  0xf7   :  { %v788_v53 = vadd.f32 1.0, %v886_v49  ;;  %v427_v28 = vmul.f32 %v1172_v10, %v345_v18  ;;  %v533_v48 = vsel %vm501_vm2, %v484_v8, 0.0  ;;  %v868_v32 = vmul.f32 -1.442695, %v729_v30  ;;  %296 = vst.msk [vmem:[#allocation3 + $0x70] sm:$0xff] %vm40_vm0, %v280_v55 }
  0xf8   :  { %v888_v47 = vpop.eup %887  ;;  %v867_v45 = vmul.f32 -1.442695, %v728_v50  ;;  %v619_v40 = vrot.slane %v1400_v63, 1  ;;  %295 = vst.msk [vmem:[#allocation3 + $0x68] sm:$0xff] %vm40_vm0, %v279_v43  ;;  %v869_v51 = vmul.f32 -1.442695, %v730_v25  ;;  %v397_v56 = vmul.f32 %v1169_v6, %v1279_v60 }
  0xf9   :  { %v789_v58 = vadd.f32 1.0, %v888_v47  ;;  %895 = vrcp.f32 %v788_v53  ;;  %v443_v54 = vadd.f32 %v427_v28, %v410_v20  ;;  %v396_v37 = vmul.f32 %v1169_v6, %v1290_v2 }
  0xfa   :  { %v1418_v16 = vmul.f32 0.00390625, %v317_v24  ;;  %897 = vpow2.f32 %v867_v45  ;;  %v550_v18 = vmul.f32 %v1181_v22, %v533_v48  ;;  %v399_v61 = vmul.f32 %v1169_v6, %v334_v38 }
  0xfb   :  { %899 = vrcp.f32 %v789_v58  ;;  %v469_v36 = vrot.slane %v443_v54, 7  ;;  %v618_v59 = vrot.slane %v443_v54, 1  ;;  %v624_v26 = vrot.slane %v1245_v31, 1 }
  0xfc   :  { %901 = vpow2.f32 %v868_v32  ;;  %v470_v29 = vrot.slane %v1400_v63, 7  ;;  %v584_v4 = vmul.f32 %v1174_v11, %v1253_v41  ;;  %v348_v8 = vld [vmem:[#allocation3 + $0x60] sm:$0xff]  ;;  %v585_v42 = vmul.f32 %v1174_v11, %v443_v54 }
  0xfd   :  { %v890_v0 = vpop.eup %889  ;;  %903 = vpow2.f32 %v869_v51  ;;  %v483_v1 = vsel %vm476_vm1, %v468_v21, %v469_v36  ;;  %v631_v62 = vsel %vm625_vm3, %v618_v59, %v619_v40  ;;  %v632_v3 = vsel %vm625_vm3, %v617_v52, %v618_v59  ;;  %v347_v5 = vld [vmem:[#allocation3 + $0x58] sm:$0xff] }
  0xfe   :  { %v892_v39 = vpop.eup %891  ;;  %v790_v44 = vadd.f32 1.0, %v890_v0  ;;  %v551_v13 = vmul.f32 %v1181_v22, %v483_v1  ;;  %v600_v7 = vadd.f32 %v584_v4, %v550_v18  ;;  %v699_v9 = vmul.f32 %v1193_v34, %v632_v3  ;;  %v350_v15 = vld [vmem:[#allocation3 + $0x70] sm:$0xff] }
  0xff   :  { %v791_v21 = vadd.f32 1.0, %v892_v39  ;;  %v364_v46 = vadd.f32 %v348_v8, %v1279_v60  ;;  %v482_v17 = vsel %vm476_vm1, %v469_v36, %v470_v29  ;;  %v700_v41 = vmul.f32 %v1193_v34, %v631_v62  ;;  %v349_v49 = vld [vmem:[#allocation3 + $0x68] sm:$0xff] }
 0x100   :  { %905 = vrcp.f32 %v790_v44  ;;  %v601_v25 = vadd.f32 %v585_v42, %v551_v13  ;;  %v715_v19 = vadd.f32 %v699_v9, %v600_v7  ;;  %v363_v33 = vadd.f32 %v347_v5, %v1290_v2 }
 0x101   :  { %907 = vrcp.f32 %v791_v21  ;;  %v380_v52 = vmul.f32 0.5, %v364_v46  ;;  %v641_v60 = vsel %vm625_vm3, %v624_v26, %v609_v12  ;;  %v430_v55 = vmul.f32 %v1172_v10, %v348_v8 }
 0x102   :  { %v894_v50 = vpop.eup %893  ;;  %v716_v30 = vadd.f32 %v700_v41, %v601_v25  ;;  %v366_v43 = vadd.f32 %v350_v15, %v334_v38  ;;  %v732_v53 = vadd.f32 %v1196_v35, %v715_v19  ;;  %v379_v28 = vmul.f32 0.5, %v363_v33 }
 0x103   :  { %v795_v24 = vadd.f32 1.0, %v894_v50  ;;  %v413_v20 = vadd.f32 %v397_v56, %v380_v52  ;;  %v552_v2 = vmul.f32 %v1181_v22, %v482_v17  ;;  %v365_v14 = vadd.f32 %v349_v49, %v1418_v16 }
 0x104   :  { %v733_v47 = vadd.f32 %v1196_v35, %v716_v30  ;;  %v382_v48 = vmul.f32 0.5, %v366_v43  ;;  %v871_v45 = vmul.f32 -1.442695, %v732_v53  ;;  %v412_v12 = vadd.f32 %v396_v37, %v379_v28 }
 0x105   :  { %909 = vrcp.f32 %v795_v24  ;;  %v1459_v32 = vadd.f32 %v430_v55, %v413_v20  ;;  %v429_v38 = vmul.f32 %v1172_v10, %v347_v5  ;;  %v432_v56 = vmul.f32 %v1172_v10, %v350_v15 }
 0x106   :  { %v896_v58 = vpop.eup %895  ;;  %v872_v51 = vmul.f32 -1.442695, %v733_v47  ;;  %v415_v54 = vadd.f32 %v399_v61, %v382_v48  ;;  %v586_v36 = vmul.f32 %v1174_v11, %v1400_v63  ;;  %911 = vpow2.f32 %v871_v45 }
 0x107   :  { %v898_v18 = vpop.eup %897  ;;  %836 = vst.msk [vmem:[%s1590_s2] sm:$0xff] %vm40_vm0, %v896_v58  ;;  %v472_v59 = vrot.slane %v1459_v32, 7  ;;  %v381_v37 = vmul.f32 0.5, %v365_v14  ;;  %v445_v1 = vadd.f32 %v429_v38, %v412_v12  ;;  %v398_v8 = vmul.f32 %v1169_v6, %v1418_v16 }
 0x108   :  { %v900_v0 = vpop.eup %899  ;;  %v792_v4 = vadd.f32 1.0, %v898_v18  ;;  %913 = vpow2.f32 %v872_v51  ;;  %v448_v61 = vadd.f32 %v432_v56, %v415_v54  ;;  %v591_v39 = vmul.f32 %v1174_v11, %v1245_v31 }
 0x109   :  { %v902_v62 = vpop.eup %901  ;;  %v689_v44 = vsel %vm665_vm4, %v641_v60, 0.0  ;;  %837 = vst.msk [vmem:[%s1590_s2 + $0x8] sm:$0xff] %vm40_vm0, %v900_v0  ;;  %v621_v13 = vrot.slane %v1459_v32, 1  ;;  %v602_v5 = vadd.f32 %v586_v36, %v552_v2  ;;  %v471_v7 = vrot.slane %v445_v1, 7 }
 0x10a   :  { %v904_v42 = vpop.eup %903  ;;  %v793_v3 = vadd.f32 1.0, %v902_v62  ;;  %915 = vrcp.f32 %v792_v4  ;;  %v620_v6 = vrot.slane %v445_v1, 1  ;;  %v474_v16 = vrot.slane %v448_v61, 7 }
 0x10b   :  { %v794_v21 = vadd.f32 1.0, %v904_v42  ;;  %v431_v9 = vmul.f32 %v1172_v10, %v349_v49  ;;  %v480_v23 = vsel %vm476_vm1, %v471_v7, %v472_v59  ;;  %v481_v46 = vsel %vm476_vm1, %v470_v29, %v471_v7 }
 0x10c   :  { %917 = vrcp.f32 %v793_v3  ;;  %v414_v15 = vadd.f32 %v398_v8, %v381_v37  ;;  %v553_v25 = vmul.f32 %v1181_v22, %v481_v46  ;;  %v587_v41 = vmul.f32 %v1174_v11, %v445_v1 }
 0x10d   :  { %v906_v17 = vpop.eup %905  ;;  %919 = vrcp.f32 %v794_v21  ;;  %v629_v19 = vsel %vm625_vm3, %v620_v6, %v621_v13  ;;  %v554_v52 = vmul.f32 %v1181_v22, %v480_v23  ;;  %v630_v29 = vsel %vm625_vm3, %v619_v40, %v620_v6 }
 0x10e   :  { %v908_v10 = vpop.eup %907  ;;  %838 = vst.msk [vmem:[%s1590_s2 + $0x10] sm:$0xff] %vm40_vm0, %v906_v17  ;;  %v477_v33 = vsel %vm476_vm1, %v474_v16, %v475_v27  ;;  %v623_v49 = vrot.slane %v448_v61, 1  ;;  %v603_v50 = vadd.f32 %v587_v41, %v553_v25  ;;  %v701_v60 = vmul.f32 %v1193_v34, %v630_v29 }
 0x10f   :  { %839 = vst.msk [vmem:[%s1590_s2 + $0x18] sm:$0xff] %vm40_vm0, %v908_v10  ;;  %v702_v30 = vmul.f32 %v1193_v34, %v629_v19  ;;  %v557_v63 = vmul.f32 %v1181_v22, %v477_v33  ;;  %v706_v40 = vmul.f32 %v1193_v34, %v689_v44  ;;  %v588_v55 = vmul.f32 %v1174_v11, %v1459_v32 }
 0x110   :  { %v447_v43 = vadd.f32 %v431_v9, %v414_v15  ;;  %v717_v27 = vadd.f32 %v701_v60, %v602_v5  ;;  %v590_v53 = vmul.f32 %v1174_v11, %v448_v61  ;;  %v626_v47 = vsel %vm625_vm3, %v623_v49, %v624_v26 }
 0x111   :  { %v718_v24 = vadd.f32 %v702_v30, %v603_v50  ;;  %v607_v20 = vadd.f32 %v591_v39, %v557_v63  ;;  %v604_v2 = vadd.f32 %v588_v55, %v554_v52  ;;  %v705_v62 = vmul.f32 %v1193_v34, %v626_v47 }
 0x112   :  { %v910_v28 = vpop.eup %909  ;;  %v473_v48 = vrot.slane %v447_v43, 7  ;;  %v622_v14 = vrot.slane %v447_v43, 1  ;;  %v734_v45 = vadd.f32 %v1196_v35, %v717_v27  ;;  %v589_v58 = vmul.f32 %v1174_v11, %v447_v43 }
 0x113   :  { %843 = vst.msk [vmem:[%s1590_s2 + $0x38] sm:$0xff] %vm40_vm0, %v910_v28  ;;  %v735_v32 = vadd.f32 %v1196_v35, %v718_v24  ;;  %v722_v12 = vadd.f32 %v706_v40, %v607_v20  ;;  %v912_v51 = vpop.eup %911 }
 0x114   :  { %v478_v31 = vsel %vm476_vm1, %v473_v48, %v474_v16  ;;  %v479_v26 = vsel %vm476_vm1, %v472_v59, %v473_v48  ;;  %v627_v38 = vsel %vm625_vm3, %v622_v14, %v623_v49  ;;  %v628_v54 = vsel %vm625_vm3, %v621_v13, %v622_v14 }
 0x115   :  { %v914_v56 = vpop.eup %913  ;;  %v796_v18 = vadd.f32 1.0, %v912_v51  ;;  %v873_v36 = vmul.f32 -1.442695, %v734_v45  ;;  %v874_v37 = vmul.f32 -1.442695, %v735_v32  ;;  %v739_v0 = vadd.f32 %v1196_v35, %v722_v12 }
 0x116   :  { %v797_v11 = vadd.f32 1.0, %v914_v56  ;;  %v555_v4 = vmul.f32 %v1181_v22, %v479_v26  ;;  %v556_v1 = vmul.f32 %v1181_v22, %v478_v31  ;;  %v703_v61 = vmul.f32 %v1193_v34, %v628_v54 }
 0x117   :  { %v916_v59 = vpop.eup %915  ;;  %921 = vrcp.f32 %v796_v18  ;;  %v878_v8 = vmul.f32 -1.442695, %v739_v0  ;;  %v704_v57 = vmul.f32 %v1193_v34, %v627_v38 }
 0x118   :  { %840 = vst.msk [vmem:[%s1590_s2 + $0x20] sm:$0xff] %vm40_vm0, %v916_v59  ;;  %923 = vrcp.f32 %v797_v11  ;;  %v605_v39 = vadd.f32 %v589_v58, %v555_v4  ;;  %v606_v44 = vadd.f32 %v590_v53, %v556_v1  ;;  %v719_v13 = vadd.f32 %v703_v61, %v604_v2 }
 0x119   :  { %v918_v42 = vpop.eup %917  ;;  %925 = vpow2.f32 %v873_v36 }
 0x11a   :  { %v920_v22 = vpop.eup %919  ;;  %841 = vst.msk [vmem:[%s1590_s2 + $0x28] sm:$0xff] %vm40_vm0, %v918_v42  ;;  %927 = vpow2.f32 %v874_v37  ;;  %v720_v3 = vadd.f32 %v704_v57, %v605_v39  ;;  %v721_v34 = vadd.f32 %v705_v62, %v606_v44  ;;  %v736_v5 = vadd.f32 %v1196_v35, %v719_v13 }
 0x11b   :  { %842 = vst.msk [vmem:[%s1590_s2 + $0x30] sm:$0xff] %vm40_vm0, %v920_v22  ;;  %929 = vpow2.f32 %v878_v8 }
 0x11c   :  { %v737_v7 = vadd.f32 %v1196_v35, %v720_v3  ;;  %v738_v21 = vadd.f32 %v1196_v35, %v721_v34  ;;  %v875_v6 = vmul.f32 -1.442695, %v736_v5 }
 0x11e   :  { %931 = vpow2.f32 %v875_v6  ;;  %v876_v16 = vmul.f32 -1.442695, %v737_v7  ;;  %v877_v9 = vmul.f32 -1.442695, %v738_v21 }
 0x120   :  { %933 = vpow2.f32 %v876_v16 }
 0x121   :  { %935 = vpow2.f32 %v877_v9 }
 0x124   :  { %v922_v23 = vpop.eup %921 }
 0x125   :  { %v924_v46 = vpop.eup %923  ;;  %844 = vst.msk [vmem:[%s1590_s2 + $0x40] sm:$0xff] %vm40_vm0, %v922_v23 }
 0x126   :  { %v926_v15 = vpop.eup %925  ;;  %845 = vst.msk [vmem:[%s1590_s2 + $0x48] sm:$0xff] %vm40_vm0, %v924_v46 }
 0x127   :  { %v928_v35 = vpop.eup %927  ;;  %v798_v17 = vadd.f32 1.0, %v926_v15 }
 0x128   :  { %v930_v25 = vpop.eup %929  ;;  %v799_v41 = vadd.f32 1.0, %v928_v35 }
 0x129   :  { %937 = vrcp.f32 %v798_v17  ;;  %v803_v19 = vadd.f32 1.0, %v930_v25 }
 0x12a   :  { %939 = vrcp.f32 %v799_v41 }
 0x12b   :  { %v932_v10 = vpop.eup %931  ;;  %941 = vrcp.f32 %v803_v19 }
 0x12c   :  { %v800_v52 = vadd.f32 1.0, %v932_v10 }
 0x12d   :  { %v934_v29 = vpop.eup %933 }
 0x12e   :  { %v936_v33 = vpop.eup %935  ;;  %v801_v49 = vadd.f32 1.0, %v934_v29  ;;  %943 = vrcp.f32 %v800_v52 }
 0x12f   :  { %v802_v50 = vadd.f32 1.0, %v936_v33 }
 0x130   :  { %945 = vrcp.f32 %v801_v49 }
 0x131   :  { %947 = vrcp.f32 %v802_v50 }
 0x136   :  { %v938_v60 = vpop.eup %937 }
 0x137   :  { %v940_v30 = vpop.eup %939  ;;  %846 = vst.msk [vmem:[%s1590_s2 + $0x50] sm:$0xff] %vm40_vm0, %v938_v60 }
 0x138   :  { %v942_v63 = vpop.eup %941  ;;  %847 = vst.msk [vmem:[%s1590_s2 + $0x58] sm:$0xff] %vm40_vm0, %v940_v30 }
 0x139   :  { %851 = vst.msk [vmem:[%s1590_s2 + $0x78] sm:$0xff] %vm40_vm0, %v942_v63 }
 0x13b   :  { %v944_v40 = vpop.eup %943 }
 0x13c   :  { %848 = vst.msk [vmem:[%s1590_s2 + $0x60] sm:$0xff] %vm40_vm0, %v944_v40 }
 0x13d   :  { %v946_v55 = vpop.eup %945 }
 0x13e   :  { %v948_v43 = vpop.eup %947  ;;  %849 = vst.msk [vmem:[%s1590_s2 + $0x68] sm:$0xff] %vm40_vm0, %v946_v55 }
 0x13f   :  { %850 = vst.msk [vmem:[%s1590_s2 + $0x70] sm:$0xff] %vm40_vm0, %v948_v43 }
 0x140   :  { %856 = vsyncpa [#allocation5], 1 }
 0x141   :  { %857 = vsyncpa [#allocation6], 1 }

</bundles_post_ra>
